<compile_context>
chip_gen: v7x
topology: tpu7x:2x2x1
jax: 0.10.0
libtpu: 0.0.40
codegen_flags: <defaults>
</compile_context>

<pallas_src>
import functools
import math

import jax
import jax.numpy as jnp
import numpy as np
from jax.experimental import pallas as pl
from jax.experimental.pallas import tpu as pltpu


def _tap_matmul_kernel(x_ref, w_ref, o_ref):
    """(r, 3C) bf16 @ (3C, D) bf16 -> (r, D) block.  Pure MXU + lane-dense store."""
    o_ref[...] = jnp.dot(x_ref[...], w_ref[...],
                         preferred_element_type=jnp.float32).astype(o_ref.dtype)


_FALLBACK_VMEM_BYTES = 64 * 1024 * 1024   # conservative: v7x per-TensorCore physical VMEM


def _physical_vmem_bytes():
    try:
        cap = getattr(pltpu.get_tpu_info(), "vmem_capacity_bytes", None)
        if cap:
            return int(cap)
    except Exception:
        pass
    return _FALLBACK_VMEM_BYTES


def _choose_block_rows(total_rows, k_cols, d_model, *, in_bytes=2, out_bytes=4,
                       target_rows=8192):
    """Rows per grid block: multiple of 8 sublanes, big enough to amortize the
    ~0.35 us/step pipeline overhead, small enough that the double-buffered in+out
    blocks fit a generation-aware VMEM budget, and (when >1 step) an even step count
    so dual-TensorCore chips (v7x) stay balanced on the 'parallel' axis."""
    base = 8
    per_row = 2 * (k_cols * in_bytes + d_model * out_bytes)        # double-buffered in+out
    budget = min(_physical_vmem_bytes() // 6, 24 * 1024 * 1024)    # ~21 MiB v5e/v6e, ~10.7 MiB v7x
    cap_rows = max(base, (budget // per_row) // base * base)
    rows_to_base = base * pl.cdiv(total_rows, base)
    r = max(base, (min(target_rows, cap_rows) // base) * base)
    r = min(r, rows_to_base)
    steps = pl.cdiv(rows_to_base, r)
    if steps > 1 and steps % 2 == 1:
        r = base * pl.cdiv(pl.cdiv(rows_to_base, steps + 1), base)
    return r


def token_embedding_conv(patches, weight_oik, *, compute_dtype=jnp.bfloat16,
                         out_dtype=jnp.float32):
    """patches: (N, P, C) ; weight_oik: (d_model, C, 3)  ->  (N, P, d_model) out_dtype.

    Conv1d(in=C, out=D, kernel=3, stride=1, padding=1, bias=False) applied over the
    patch axis, expressed as a hoisted im2col + single MXU matmul per row block.
    """
    N, P, C = patches.shape
    D, Cw, K = weight_oik.shape
    assert Cw == C and K == 3

    # Fused tap weight (3, C, D) -> (3C, D): row k*C + c multiplies tap k, channel c.
    w = jnp.transpose(weight_oik, (2, 1, 0)).reshape(3 * C, D).astype(compute_dtype)

    # Hoisted im2col: lhs row p of sequence n is [x[p-1] | x[p] | x[p+1]] with zeros at
    # the sequence ends (the conv's padding=1).  All boundary handling lives here, so
    # kernel row blocks need no sequence alignment or masking at all; the bf16 cast,
    # shifts, concat and row pad all fuse into one XLA op before the pallas_call.
    pb = patches.astype(compute_dtype)
    zero = jnp.zeros((N, 1, C), dtype=compute_dtype)
    prev = jnp.concatenate([zero, pb[:, :-1, :]], axis=1)
    nxt = jnp.concatenate([pb[:, 1:, :], zero], axis=1)
    lhs = jnp.concatenate([prev, pb, nxt], axis=-1).reshape(N * P, 3 * C)

    rows = N * P
    r = _choose_block_rows(rows, 3 * C, D)
    rows_pad = r * pl.cdiv(rows, r)
    if rows_pad != rows:
        lhs = jnp.pad(lhs, ((0, rows_pad - rows), (0, 0)))   # zero rows -> zero out, sliced off

    # Raise the scoped-VMEM limit to cover the (generation-bounded) blocks, with headroom.
    block_bytes = (2 * (r * 3 * C * jnp.dtype(compute_dtype).itemsize
                        + r * D * jnp.dtype(out_dtype).itemsize)
                   + 3 * C * D * jnp.dtype(compute_dtype).itemsize)
    phys = _physical_vmem_bytes()
    vmem_limit = int(min(phys // 2, max(32 * 1024 * 1024, block_bytes + (8 << 20))))

    # TODO(synk): for d_model < 128 a lane-dense (rows*D//128, 128) output slab would
    # avoid masked stores on the dominant write path; not needed here (D is 128).
    out = pl.pallas_call(
        _tap_matmul_kernel,
        out_shape=jax.ShapeDtypeStruct((rows_pad, D), out_dtype),
        grid=(rows_pad // r,),
        in_specs=[
            pl.BlockSpec((r, 3 * C), lambda i: (i, 0)),
            pl.BlockSpec((3 * C, D), lambda i: (0, 0)),   # weight stays VMEM-resident
        ],
        out_specs=pl.BlockSpec((r, D), lambda i: (i, 0)),
        compiler_params=pltpu.CompilerParams(
            dimension_semantics=("parallel",),
            vmem_limit_bytes=vmem_limit),
    )(lhs, w)

    if rows_pad != rows:
        out = out[:rows]
    return out.reshape(N, P, D)


@functools.partial(jax.jit, static_argnums=(2, 3))
def _patch_embed_impl(x, conv_weight, patch_len, patch_stride):
    B, n_vars, L = x.shape
    # ReplicationPad1d((0, patch_stride)) then unfold(dim=-1, size=patch_len, step=patch_len).
    P = (L + patch_stride - patch_len) // patch_len + 1
    used = P * patch_len
    if used <= L:
        core = x[..., :used]
    else:
        # Only the tail patch ever reads replicated values: append just those few
        # elements instead of materializing a full edge-padded copy of x.
        tail = jnp.broadcast_to(x[..., L - 1:], (B, n_vars, used - L))
        core = jnp.concatenate([x, tail], axis=-1)
    patches = core.reshape(B * n_vars, P, patch_len)
    # TokenEmbedding: Conv1d over the patch axis (in_channels = patch_len, bias=False).
    # Dropout(p=0.0) is the identity.
    return token_embedding_conv(patches, conv_weight)


def patch_embedding_forward(x, conv_weight, patch_len, patch_stride):
    """x: (B, n_vars, L) f32 -> ((B*n_vars, num_patches, d_model) f32, n_vars)."""
    n_vars = x.shape[1]
    out = _patch_embed_impl(x, conv_weight, patch_len, patch_stride)
    return out, n_vars


def _init_conv_weight(key, d_model, patch_len, kernel=3):
    """kaiming_normal_(mode='fan_in', nonlinearity='leaky_relu', a=0) on (O, I, K)."""
    fan_in = patch_len * kernel
    std = math.sqrt(2.0 / fan_in)
    return std * jax.random.normal(key, (d_model, patch_len, kernel), dtype=jnp.float32)


if __name__ == "__main__":
    # Small deterministic shapes: batch=2, n_vars=4, seq_len=28, patch_len=4,
    # patch_stride=4, d_model=128  =>  N = 8 sequences, num_patches = 8.
    B, n_vars, L = 2, 4, 28
    patch_len, patch_stride, d_model = 4, 4, 128

    key = jax.random.PRNGKey(0)
    kx, kw = jax.random.split(key)
    x = jax.random.normal(kx, (B, n_vars, L), dtype=jnp.float32)
    conv_weight = _init_conv_weight(kw, d_model, patch_len)

    out, nv = patch_embedding_forward(x, conv_weight, patch_len, patch_stride)
    out = jax.block_until_ready(out)

    # Pure-JAX reference (same pad/unfold; conv via lax.conv_general_dilated) computed
    # from the same bf16-rounded inputs/weights the kernel consumes (deliberate choice:
    # bf16 MXU feed, f32 accumulation).
    xb = x.astype(jnp.bfloat16).astype(jnp.float32)
    wb = conv_weight.astype(jnp.bfloat16).astype(jnp.float32)
    x_pad = jnp.pad(xb, ((0, 0), (0, 0), (0, patch_stride)), mode="edge")
    P = (L + patch_stride - patch_len) // patch_len + 1
    patches = x_pad[:, :, : P * patch_len].reshape(B * n_vars, P, patch_len)
    conv_in = jnp.transpose(patches, (0, 2, 1))            # (N, C_in, P)
    ref = jax.lax.conv_general_dilated(
        conv_in, wb, window_strides=(1,), padding=[(1, 1)],
        dimension_numbers=("NCH", "OIH", "NCH"),
        preferred_element_type=jnp.float32,
        precision=jax.lax.Precision.HIGHEST)
    ref = jnp.transpose(ref, (0, 2, 1))                    # (N, P, d_model)

    assert out.shape == (B * n_vars, P, d_model)
    assert nv == n_vars
    np.testing.assert_allclose(np.asarray(out), np.asarray(ref), rtol=1e-2, atol=1e-2)
    print("KERNEL_OK")
</pallas_src>

<mosaic_0001>
module attributes {stable_mosaic.version = 11 : i64} {
  func.func @_tap_matmul_kernel(%arg0: i32, %arg1: memref<64x12xbf16, #tpu.memory_space<vmem>>, %arg2: memref<12x128xbf16, #tpu.memory_space<vmem>>, %arg3: memref<64x128xf32, #tpu.memory_space<vmem>>) attributes {dimension_semantics = [#tpu.dimension_semantics<parallel>], iteration_bounds = array<i64: 1>, scalar_prefetch = 0 : i64, scratch_operands = 0 : i64, tpu.core_type = #tpu.core_type<tc>, window_params = [{transform_indices = @transform_0, window_bounds = array<i64: 64, 12>}, {pipeline_mode = #tpu.pipeline_mode<synchronous>, transform_indices = @transform_1, window_bounds = array<i64: 12, 128>}, {transform_indices = @transform_2, window_bounds = array<i64: 64, 128>}]} {
    %c0 = arith.constant 0 : index
    %c0_0 = arith.constant 0 : index
    %0 = vector.load %arg1[%c0, %c0_0] : memref<64x12xbf16, #tpu.memory_space<vmem>>, vector<64x12xbf16>
    %c0_1 = arith.constant 0 : index
    %c0_2 = arith.constant 0 : index
    %1 = vector.load %arg2[%c0_1, %c0_2] : memref<12x128xbf16, #tpu.memory_space<vmem>>, vector<12x128xbf16>
    %cst = arith.constant dense<0.000000e+00> : vector<64x128xf32>
    %2 = tpu.matmul %0, %1, %cst {dimension_numbers = #tpu.dot_dimension_numbers<[1], [0], [0], [1], [0, 0, 1, 1], [], []>} : vector<64x12xbf16>, vector<12x128xbf16>, vector<64x128xf32> -> vector<64x128xf32>
    %c0_3 = arith.constant 0 : index
    %c0_4 = arith.constant 0 : index
    %3 = vector.load %arg3[%c0_3, %c0_4] : memref<64x128xf32, #tpu.memory_space<vmem>>, vector<64x128xf32>
    tpu.vector_store %arg3[%c0_3, %c0_4], %2 {strides = array<i32>} : memref<64x128xf32, #tpu.memory_space<vmem>>, vector<64x128xf32>,
    return
  }
  func.func @transform_0(%arg0: i32) -> (i32, i32) {
    %c0_i32 = arith.constant 0 : i32
    %c0_i32_0 = arith.constant 0 : i32
    return %arg0, %c0_i32 : i32, i32
  }
  func.func @transform_1(%arg0: i32) -> (i32, i32) {
    %c0_i32 = arith.constant 0 : i32
    %c0_i32_0 = arith.constant 0 : i32
    %c0_i32_1 = arith.constant 0 : i32
    return %c0_i32, %c0_i32_0 : i32, i32
  }
  func.func @transform_2(%arg0: i32) -> (i32, i32) {
    %c0_i32 = arith.constant 0 : i32
    %c0_i32_0 = arith.constant 0 : i32
    return %arg0, %c0_i32 : i32, i32
  }
}

</mosaic_0001>

<bundles_post_ra>
// kernel: _patch_embed_impl.1
= control target key start
LH: loop header
LB: loop body
LE: loop exit
PB: predicated region body
PF: predicated region fallthrough
CT: control target
= control target key end

     0   :  { %vm61_vm0 = vcmask 1045504   ;;  %vm48_vm1 = vcmask 97280   ;;  %s259_s0 = inlined_call_operand.vmem [shape: bf16[64,12], index: 0, kind: input, shape index: {}]   ;;  %s260_s1 = inlined_call_operand.vmem [shape: bf16[12,128], index: 1, kind: input, shape index: {}]   ;;  %s261_s2 = inlined_call_operand.hbm [shape: f32[64,128], index: 2, kind: output, shape index: {}]  }
   0x1   :  { %v185_v0 = vld [vmem:[%s260_s1] sm:$0x3f]   ;;  %v187_v3 = vld [vmem:[%s259_s0 + $0x10] sm:$0xff]   ;;  %v188_v4 = vld [vmem:[%s259_s0 + $0x8] sm:$0xff]  }
   0x2   :  { %v186_v1 = vld [vmem:[%s259_s0] sm:$0xff]   ;;  %180 = vmatprep.subr.msk.bf16.mxu0 %vm61_vm0, %v185_v0  ;;  %181 = vmatprep.subr.msk.bf16.mxu1 %vm61_vm0, %v185_v0  ;;  %v63_v2 = vsel %vm61_vm0, %v185_v0, 0  ;;  %v189_v5 = vld [vmem:[%s259_s0 + $0x18] sm:$0xff]  }
   0x3   :  { %169 = vmatpush3.bf16.msra.mxu0 %v63_v2  ;;  %179 = vmatpush3.bf16.msra.mxu1 %v63_v2 }
   0x4   :  { %170 = vmatprep.mubr.msk.bf16.mxu0 %vm48_vm1, %v186_v1  ;;  %174 = vmatprep.mubr.msk.bf16.mxu1 %vm48_vm1, %v187_v3 }
   0x5   :  { %7 = vsyncpa [#allocation3], 0  ;;  %s214_s18 = smov [#allocation2]  }
   0x6   :  { %171 = vmatmul.mubr.msk.bf16.vlgmr.msra.gmra.mrb[0].mxu0 %vm48_vm1, %v188_v4  ;;  %175 = vmatmul.mubr.msk.bf16.vlgmr.msra.gmra.mrb[0].mxu1 %vm48_vm1, %v189_v5  ;;  %s143_s19 = sshll.u32 %s214_s18, 4  ;;  %s144_s19 = int_to_ptr.vmem [resolvable:$true] %s143_s19 }
   0x7   :  { %s190_s0 = scalar_lea.vmem %s144_s19, 1024  ;;  %p195_p1 = scmp.lt.s32.totalorder %s144_s19, %s144_s19 }
   0x8   :  { %p191_p0 = scmp.ne.s32.totalorder %s144_s19, %s190_s0  ;;  %p196_p2 = scmp.lt.s32.totalorder %s190_s0, %s190_s0 }
   0xa   :  { %p197_p3 = por %p196_p2, %p195_p1 }
   0xc   :  { %p198_p4 = pnand %p197_p3, %p191_p0 }
  0xd9   :  { %v172_v6 = vpop.f32.mrb[0].mxu0  ;;  %v176_v7 = vpop.f32.mrb[0].mxu1 }
  0xda   :  { %132 = vst [vmem:[#allocation2 + $0x10] sm:$0xff] %v172_v6  ;;  %v99_v8 = vpop.f32.mrb[1].mxu0  ;;  %136 = vst [vmem:[#allocation2 + $0x30] sm:$0xff] %v176_v7  ;;  %v115_v9 = vpop.f32.mrb[1].mxu1 }
  0xdb   :  { %130 = vst [vmem:[#allocation2] sm:$0xff] %v99_v8  ;;  %v173_v10 = vpop.f32.mrb[2].mxu0  ;;  %134 = vst [vmem:[#allocation2 + $0x20] sm:$0xff] %v115_v9  ;;  %v177_v11 = vpop.f32.mrb[2].mxu1 }
  0xdc   :  { %133 = vst [vmem:[#allocation2 + $0x18] sm:$0xff] %v173_v10  ;;  %v102_v12 = vpop.f32.mrb[3].mxu0  ;;  %137 = vst [vmem:[#allocation2 + $0x38] sm:$0xff] %v177_v11  ;;  %v118_v13 = vpop.f32.mrb[3].mxu1 }
  0xdd   :  { %131 = vst [vmem:[#allocation2 + $0x8] sm:$0xff] %v102_v12  ;;  %135 = vst [vmem:[#allocation2 + $0x28] sm:$0xff] %v118_v13 }
  0xde   :  { %201 = shalt.err (!%p198_p4)
}
  0xdf   :  { %s202_s22 = scalar_lea.hbm %s261_s2, 1024 }
  0xe0   :  { %p203_p5 = scmp.ne.s32.totalorder %s261_s2, %s202_s22  ;;  %p206_p6 = scmp.lt.u32.totalorder %s202_s22, %s261_s2 }
  0xe2   :  { %p208_p7 = pnand %p206_p6, %p203_p5 }
  0xe4   :  { %211 = shalt.err (!%p208_p7)
}
  0xe5   :  { %s215_s27 = smov 128   ;;  %s216_s28 = smov 8  }
  0xe6   :  { %149 = dma.vmem_to_hbm [thread:$0]  %s144_s19, 1024, %s261_s2, [#allocation3], %s215_s27, %s215_s27, %s216_s28  }
  0xe7   :  { %212 = dma.done.wait [#allocation3], 1024  }
  0xe8   :  { %213 = vsyncadd [#allocation3], 4294966272 }
  0xe9   :  { %153 = vsyncpa [#allocation3], 1 }

</bundles_post_ra>
